<compile_context>
chip_gen: v5e
topology: v5e:2x2
jax: 0.10.0
libtpu: 0.0.40
codegen_flags: <defaults>
</compile_context>

<pallas_src>
import jax
import jax.numpy as jnp
from jax.experimental import pallas as pl
from jax.experimental.pallas import tpu as pltpu


# ----------------------------- Pallas kernel --------------------------------
def _pca_decoder_kernel(x_ref, w_ref, b_ref, axis_ref, o_ref):
    # x_ref:    (B, M)  f32  VMEM   (modes_output)
    # w_ref:    (M, 3P) f32  VMEM   (folded weight, columns in p*3+c order)
    # b_ref:    (1, 3P) f32  VMEM   (folded bias)
    # axis_ref: (B,)    f32  SMEM   (per-example axis_parameters scalars)
    # o_ref:    (B, 3P) f32  VMEM
    y = jnp.dot(x_ref[...], w_ref[...], preferred_element_type=jnp.float32)
    y = y + b_ref[...]
    # Per-row scalar scale; B is static & tiny, scalars come from SMEM/sregs.
    for b in range(o_ref.shape[0]):
        o_ref[b:b + 1, :] = (y[b:b + 1, :] * axis_ref[b]).astype(o_ref.dtype)


# ------------------------ one-time parameter folding ------------------------
def prepare_pca_decoder_params(raw, *, num_points, scale):
    """Fold spans/means/offset/scale into a single weight+bias and permute
    columns so the kernel output is directly (B, P, 3)-viewable. Runs once."""
    P = num_points
    TP = 3 * P
    w_t = raw["w_t"].astype(jnp.float32)            # (M, 3P), col j = c*P + p
    spans = raw["mode_spans"].astype(jnp.float32)   # (M,)
    means = raw["mode_means"].astype(jnp.float32)   # (M,)
    bias = raw["bias"].astype(jnp.float32)          # (3P,)
    offset = raw["offset"].astype(jnp.float32)      # (3,)
    inv_scale = 1.0 / float(scale)

    w_fold = (spans[:, None] * w_t) * inv_scale                          # (M, 3P)
    b_fold = (means @ w_t + bias + jnp.repeat(offset, P)) * inv_scale    # (3P,)

    # Old flat index c*P + p  ->  new flat index p*3 + c.
    perm = jnp.arange(TP).reshape(3, P).T.reshape(-1)   # perm[p*3+c] = c*P+p
    w_fold = w_fold[:, perm]
    b_fold = b_fold[perm]
    return {"w": w_fold, "b": b_fold.reshape(1, TP)}


# ------------------------------ pcaD forward ---------------------------------
def pca_decoder_forward(modes, axis_parameters, prepared):
    B = modes.shape[0]
    TP = prepared["w"].shape[1]
    P = TP // 3

    y = pl.pallas_call(
        _pca_decoder_kernel,
        out_shape=jax.ShapeDtypeStruct((B, TP), jnp.float32),
        in_specs=[
            pl.BlockSpec(memory_space=pltpu.MemorySpace.VMEM),   # x
            pl.BlockSpec(memory_space=pltpu.MemorySpace.VMEM),   # W'
            pl.BlockSpec(memory_space=pltpu.MemorySpace.VMEM),   # b'
            pl.BlockSpec(memory_space=pltpu.MemorySpace.SMEM),   # axis scalars
        ],
        out_specs=pl.BlockSpec(memory_space=pltpu.MemorySpace.VMEM),
    )(modes.astype(jnp.float32), prepared["w"], prepared["b"],
      axis_parameters.astype(jnp.float32))

    mesh = y.reshape(B, P, 3)   # free view: columns already in p*3+c order
    if B == 1:                  # torch .squeeze(0)
        mesh = mesh[0]
    return mesh


# ------------------- LearnableInputPPModel.forward (JAX) --------------------
def learnable_input_pp_forward(learned, pca_prepared, slice_shifts_mask):
    """Mirrors LearnableInputPPModel.forward. `learned` plays the role of
    learned_inputs(ones_input) — a dict of per-example learnable tensors."""
    modes_output = learned["modes_output"]            # (B, num_modes)
    volume_shift = learned["volume_shift"]            # (B, 3)
    x_shifts = learned["x_shifts"] * slice_shifts_mask    # (B, S, 1)
    y_shifts = learned["y_shifts"] * slice_shifts_mask    # (B, S, 1)
    global_rotations = learned["global_rotations"]    # (B, 3)
    axis_parameters = learned["axis_parameters"]      # (B,)

    slice_shifts = jnp.concatenate([x_shifts, y_shifts, y_shifts * 0], axis=-1)
    predicted_cp = pca_decoder_forward(modes_output, axis_parameters, pca_prepared)

    # TODO(synk): warp_and_slice_model (voxel warp + slicing submodule) has no
    # definition in the spec, so predicted_slices is not produced here.
    return (modes_output, volume_shift, global_rotations,
            predicted_cp, slice_shifts, axis_parameters)


# ------------------------------ pure-JAX reference ---------------------------
def pca_decoder_reference(x, axis_parameters, raw, *, num_points, scale):
    """Mirrors the PyTorch pcaD forward with the original op ordering."""
    B, _ = x.shape
    P = num_points
    x_dn = x * raw["mode_spans"] + raw["mode_means"]
    y = x_dn @ raw["w_t"] + raw["bias"]                     # (B, 3P)
    mesh = y.reshape(B, 3, P).transpose(0, 2, 1)            # (B, P, 3)
    mesh = (mesh + raw["offset"]) / scale
    mesh = mesh * axis_parameters[:, None, None]
    if B == 1:
        mesh = mesh[0]
    return mesh


if __name__ == "__main__":
    batch = 2
    num_modes = 8
    num_points = 16
    num_slices = 6
    scale = 128

    key = jax.random.PRNGKey(0)
    (k_bounds, k_means, k_off, k_w, k_b,
     k_x, k_ax, k_vs, k_xs, k_ys, k_rot) = jax.random.split(key, 11)

    # Deterministic "module parameters".
    lower = jax.random.uniform(k_bounds, (num_modes,), minval=-2.0, maxval=-0.5)
    upper = lower + jax.random.uniform(k_bounds, (num_modes,), minval=1.0, maxval=3.0)
    mode_bounds = jnp.stack([lower, upper], axis=1)              # (num_modes, 2)
    raw_params = {
        "mode_spans": (mode_bounds[:, 1] - mode_bounds[:, 0]) / 2.0,   # (M,)
        "mode_means": jax.random.normal(k_means, (num_modes,)) * 0.1,  # (M,)
        "offset": jax.random.normal(k_off, (3,)),                      # (3,)
        # fc1: Linear(num_modes, 3*num_points); torch weight is (3P, M).
        "w_t": (jax.random.normal(k_w, (3 * num_points, num_modes)) * 0.05).T,
        "bias": jax.random.normal(k_b, (3 * num_points,)) * 0.01,
    }

    # One-time host-side folding (module-init work, not per-forward).
    pca_prepared = prepare_pca_decoder_params(raw_params,
                                              num_points=num_points, scale=scale)

    # Outputs of learned_inputs(ones_input): per-example learnable parameters.
    learned = {
        "modes_output": jax.random.normal(k_x, (batch, num_modes)),
        "volume_shift": jax.random.normal(k_vs, (batch, 3)) * 0.1,
        "x_shifts": jax.random.normal(k_xs, (batch, num_slices, 1)) * 0.05,
        "y_shifts": jax.random.normal(k_ys, (batch, num_slices, 1)) * 0.05,
        "global_rotations": jax.random.normal(k_rot, (batch, 3)) * 0.01,
        "axis_parameters": jax.random.uniform(k_ax, (batch,), minval=0.5, maxval=1.5),
    }
    # setSliceShiftMask: SAX slices get shifts, non-SAX slices are zeroed.
    slice_shifts_mask = jnp.array([1, 1, 1, 1, 0, 0], jnp.float32)[None, :, None]

    outputs = learnable_input_pp_forward(learned, pca_prepared, slice_shifts_mask)
    outputs = jax.block_until_ready(outputs)
    (modes_output, volume_shift, global_rotations,
     predicted_cp, slice_shifts, axis_parameters) = outputs

    ref_cp = pca_decoder_reference(learned["modes_output"],
                                   learned["axis_parameters"], raw_params,
                                   num_points=num_points, scale=scale)

    assert predicted_cp.shape == (batch, num_points, 3), predicted_cp.shape
    assert slice_shifts.shape == (batch, num_slices, 3), slice_shifts.shape
    assert jnp.allclose(predicted_cp, ref_cp, atol=1e-5, rtol=1e-5), \
        "mismatch vs reference"

    print("KERNEL_OK")
</pallas_src>

<mosaic_0001>
module attributes {stable_mosaic.version = 11 : i64} {
  func.func @_pca_decoder_kernel(%arg0: memref<2x8xf32, #tpu.memory_space<vmem>>, %arg1: memref<8x48xf32, #tpu.memory_space<vmem>>, %arg2: memref<1x48xf32, #tpu.memory_space<vmem>>, %arg3: memref<2xf32, #tpu.memory_space<smem>>, %arg4: memref<2x48xf32, #tpu.memory_space<vmem>>) attributes {dimension_semantics = [], scalar_prefetch = 0 : i64, scratch_operands = 0 : i64, tpu.core_type = #tpu.core_type<tc>} {
    %c0 = arith.constant 0 : index
    %c0_0 = arith.constant 0 : index
    %0 = vector.load %arg0[%c0, %c0_0] : memref<2x8xf32, #tpu.memory_space<vmem>>, vector<2x8xf32>
    %c0_1 = arith.constant 0 : index
    %c0_2 = arith.constant 0 : index
    %1 = vector.load %arg1[%c0_1, %c0_2] : memref<8x48xf32, #tpu.memory_space<vmem>>, vector<8x48xf32>
    %cst = arith.constant dense<0.000000e+00> : vector<2x48xf32>
    %2 = tpu.matmul %0, %1, %cst {dimension_numbers = #tpu.dot_dimension_numbers<[1], [0], [0], [1], [0, 0, 1, 1], [], []>} : vector<2x8xf32>, vector<8x48xf32>, vector<2x48xf32> -> vector<2x48xf32>
    %c0_3 = arith.constant 0 : index
    %c0_4 = arith.constant 0 : index
    %3 = vector.load %arg2[%c0_3, %c0_4] : memref<1x48xf32, #tpu.memory_space<vmem>>, vector<1x48xf32>
    %4 = vector.broadcast %3 : vector<1x48xf32> to vector<2x48xf32>
    %5 = arith.addf %2, %4 : vector<2x48xf32>
    %6 = vector.extract_strided_slice %5 {offsets = [0, 0], sizes = [1, 48], strides = [1, 1]} : vector<2x48xf32> to vector<1x48xf32>
    %c0_5 = arith.constant 0 : index
    %7 = memref.load %arg3[%c0_5] : memref<2xf32, #tpu.memory_space<smem>>
    %8 = vector.broadcast %7 : f32 to vector<1x48xf32>
    %9 = arith.mulf %6, %8 : vector<1x48xf32>
    %c0_6 = arith.constant 0 : index
    %c0_7 = arith.constant 0 : index
    %10 = vector.load %arg4[%c0_6, %c0_7] : memref<2x48xf32, #tpu.memory_space<vmem>>, vector<1x48xf32>
    tpu.vector_store %arg4[%c0_6, %c0_7], %9 {strides = array<i32>} : memref<2x48xf32, #tpu.memory_space<vmem>>, vector<1x48xf32>,
    %11 = vector.extract_strided_slice %5 {offsets = [1, 0], sizes = [1, 48], strides = [1, 1]} : vector<2x48xf32> to vector<1x48xf32>
    %c1 = arith.constant 1 : index
    %12 = memref.load %arg3[%c1] : memref<2xf32, #tpu.memory_space<smem>>
    %13 = vector.broadcast %12 : f32 to vector<1x48xf32>
    %14 = arith.mulf %11, %13 : vector<1x48xf32>
    %c1_8 = arith.constant 1 : index
    %c0_9 = arith.constant 0 : index
    %15 = vector.load %arg4[%c1_8, %c0_9] : memref<2x48xf32, #tpu.memory_space<vmem>>, vector<1x48xf32>
    tpu.vector_store %arg4[%c1_8, %c0_9], %14 {strides = array<i32>} : memref<2x48xf32, #tpu.memory_space<vmem>>, vector<1x48xf32>,
    return
  }
}

</mosaic_0001>

<bundles_post_ra>
// kernel: tpu_custom_call.1
= control target key start
LH: loop header
LB: loop body
LE: loop exit
PB: predicated region body
PF: predicated region fallthrough
CT: control target
= control target key end

     0   :  { %9 = vsyncpa [#allocation3], 0  ;;  %s261_s0 = inlined_call_operand.hbm [shape: f32[2,8], index: 0, kind: input, shape index: {}]   ;;  %s262_s1 = inlined_call_operand.hbm [shape: f32[8,48], index: 1, kind: input, shape index: {}]   ;;  %s263_s2 = inlined_call_operand.vmem [shape: f32[1,48], index: 2, kind: input, shape index: {}]   ;;  %s264_s3 = inlined_call_operand.vmem [shape: f32[2], index: 3, kind: input, shape index: {}]   ;;  %s265_s4 = inlined_call_operand.hbm [shape: f32[2,48], index: 4, kind: output, shape index: {}]  }
   0x1   :  { %10 = vsyncpa [#allocation7], 0 }
   0x2   :  { %11 = vsyncpa [#allocation5], 0 }
   0x3   :  { %12 = vsyncpa [#allocation4], 0  ;;  %s18_s17 = sshll.u32 %s261_s0, 4  ;;  %s217_s18 = smov [#allocation2]   ;;  %s19_s17 = int_to_ptr.hbm [resolvable:$true] %s18_s17 }
   0x4   :  { %s20_s19 = sshll.u32 %s217_s18, 4  ;;  %s29_s22 = sshll.u32 %s262_s1, 4  ;;  %s21_s19 = int_to_ptr.vmem [resolvable:$true] %s20_s19  ;;  %s30_s22 = int_to_ptr.hbm [resolvable:$true] %s29_s22 }
   0x5   :  { %23 = dma.hbm_to_vmem [thread:$0]  %s19_s17, 32, %s21_s19, [#allocation3]  }
   0x6   :  { %s218_s23 = smov [#allocation6]   ;;  %s42_s27 = sshll.u32 %s264_s3, 4  ;;  %s43_s27 = int_to_ptr.vmem [resolvable:$true] %s42_s27 }
   0x7   :  { %s31_s24 = sshll.u32 %s218_s23, 4  ;;  %s219_s0 = smov [#allocation8]   ;;  %s32_s24 = int_to_ptr.vmem [resolvable:$true] %s31_s24 }
   0x8   :  { %34 = dma.hbm_to_vmem [thread:$0]  %s30_s22, 128, %s32_s24, [#allocation7]  }
   0x9   :  { %45 = dma.vmem_to_smem %s43_s27, 16, %s219_s0, [#allocation5]  }
   0xa   :  { %209 = dma.done.wait [#allocation3], 32  }
   0xb   :  { %210 = vsyncadd [#allocation3], 4294967264 }
   0xc   :  { %211 = dma.done.wait [#allocation7], 128  }
   0xd   :  { %212 = vsyncadd [#allocation7], 4294967168 }
   0xe   :  { %213 = dma.done.wait [#allocation5], 16  }
   0xf   :  { %214 = vsyncadd [#allocation5], 4294967280 }
  0x10   :  { %58 = sfence }
  0x11   :  { %v60_v0 = vld [vmem:[#allocation6] sm:$0xff]  ;;  %v59_v1 = vld [vmem:[#allocation2] sm:$0x3]  ;;  %vm65_vm0 = vcmask 64512   ;;  %s89_s1 = sld [smem:[#allocation8]]  ;;  %s220_s30 = smov [#allocation9]  }
  0x12   :  { %84 = vmatpush.msra.mxu0 %v60_v0  ;;  %s119_s28 = sld [smem:[#allocation8 + $0x1]]  ;;  %v124_v2 = vld [vmem:[%s263_s2] ss:$0 sm:$0xff]  ;;  %s104_s5 = sshll.u32 %s220_s30, 4  ;;  %vm92_vm1 = vcmask 385024   ;;  %vm97_vm2 = vcmask 386049   ;;  %s105_s5 = int_to_ptr.vmem [resolvable:$true] %s104_s5 }
  0x13   :  { %118 = vmatmul.msk.f32.vlgmr.msra.gmra.mxu0 %vm65_vm0, %v59_v1  ;;  %s106_s8 = sshll.u32 %s265_s4, 4  ;;  %s107_s8 = int_to_ptr.hbm [resolvable:$true] %s106_s8 }
  0x17   :  { %v90_v4 = vstv %s89_s1 }
  0x18   :  { %v95_v5 = vstv %s119_s28 }
  0x90   :  { %v86_v3 = vpop.f32.mrf.mxu0 }
  0x91   :  { %v87_v6 = vadd.f32 %v124_v2, %v86_v3 }
  0x93   :  { %v91_v7 = vmul.f32 %v90_v4, %v87_v6  ;;  %v96_v8 = vmul.f32 %v95_v5, %v87_v6 }
  0x95   :  { %93 = vst.msk [vmem:[#allocation9] sm:$0x1] %vm92_vm1, %v91_v7 }
  0x96   :  { %98 = vst.msk [vmem:[#allocation9] sm:$0x2] %vm97_vm2, %v96_v8 }
  0x97   :  { %109 = dma.vmem_to_hbm [thread:$0]  %s105_s5, 32, %s107_s8, [#allocation4]  }
  0x98   :  { %215 = dma.done.wait [#allocation4], 32  }
  0x99   :  { %216 = vsyncadd [#allocation4], 4294967264 }
  0x9a   :  { %114 = vsyncpa [#allocation3], 1 }
  0x9b   :  { %115 = vsyncpa [#allocation7], 1 }
  0x9c   :  { %116 = vsyncpa [#allocation4], 1 }
  0x9d   :  { %117 = vsyncpa [#allocation5], 1 }

</bundles_post_ra>
